<compile_context>
chip_gen: v6e
topology: v6e:2x2x1
jax: 0.10.0
libtpu: 0.0.40
codegen_flags: <defaults>
</compile_context>

<pallas_src>
import functools

import jax
import jax.numpy as jnp
from jax.experimental import pallas as pl
from jax.experimental.pallas import tpu as pltpu

LN_EPS = 1e-5  # torch.nn.LayerNorm default
LANE = 128
MAX_TILE_B = 1024  # fits comfortably in the scoped-VMEM default on v5e/v6e/v7x


def _round_up(x, m):
    return ((x + m - 1) // m) * m


def _layernorm(h, gamma, beta):
    mu = jnp.mean(h, axis=-1, keepdims=True)
    xc = h - mu
    var = jnp.mean(xc * xc, axis=-1, keepdims=True)
    inv = jax.lax.rsqrt(var + LN_EPS)
    return xc * inv * gamma + beta


def _layernorm_masked(h, gamma, beta, logical_n):
    """LayerNorm over the first `logical_n` lanes of a lane-padded tensor."""
    n_pad = h.shape[-1]
    if logical_n == n_pad:
        return _layernorm(h, gamma, beta)
    lane = jax.lax.broadcasted_iota(jnp.int32, (1, n_pad), 1)
    mask = (lane < logical_n).astype(h.dtype)
    denom = jnp.asarray(logical_n, jnp.float32)
    mu = jnp.sum(h * mask, axis=-1, keepdims=True) / denom
    xc = (h - mu) * mask
    var = jnp.sum(xc * xc, axis=-1, keepdims=True) / denom
    inv = jax.lax.rsqrt(var + LN_EPS)
    # gamma/beta are zero on padded lanes -> padded lanes stay exactly 0.
    return xc * inv * gamma + beta


def _silu(h):
    return h * jax.nn.sigmoid(h)


def fidelity_mlp_kernel(
    x_ref,
    w1_ref, b1_ref, g1_ref, be1_ref,
    w2_ref, b2_ref, g2_ref, be2_ref,
    w3_ref, b3_ref, g3_ref, be3_ref,
    w4_ref, b4_ref,
    o_ref,
    *,
    hidden_logical,
):
    x = x_ref[...].astype(jnp.float32)                        # (TB, 1)

    # Linear(1, 128): K == 1 -> broadcasted outer product (no MXU needed).
    h = x * w1_ref[...] + b1_ref[...]                          # (TB, 128)
    h = _silu(_layernorm(h, g1_ref[...], be1_ref[...]))

    # Linear(128, 256) — bf16 operands, f32 accumulate.
    h = jnp.dot(h.astype(jnp.bfloat16), w2_ref[...].astype(jnp.bfloat16),
                preferred_element_type=jnp.float32) + b2_ref[...]
    h = _silu(_layernorm(h, g2_ref[...], be2_ref[...]))

    # Linear(256, hidden_pad) — padded columns of w3/b3 are zero.
    h = jnp.dot(h.astype(jnp.bfloat16), w3_ref[...].astype(jnp.bfloat16),
                preferred_element_type=jnp.float32) + b3_ref[...]
    h = jnp.tanh(_layernorm_masked(h, g3_ref[...], be3_ref[...], hidden_logical))

    # output_proj: Linear(hidden_pad, out_pad) — padded rows/cols of w4 are zero.
    out = jnp.dot(h.astype(jnp.bfloat16), w4_ref[...].astype(jnp.bfloat16),
                  preferred_element_type=jnp.float32) + b4_ref[...]
    o_ref[...] = out.astype(o_ref.dtype)


def init_params(key, hidden_size, output_size, dtype=jnp.float32):
    """Matches FidelityMLP._init_weights (Linear ~ N(0, 0.01), bias 0; LN w=1, b=0),
    with the tail dims zero-padded up to a multiple of 128 lanes."""
    h_pad = _round_up(hidden_size, LANE)
    o_pad = _round_up(output_size, LANE)
    ks = jax.random.split(key, 4)
    std = 0.01

    w3 = jnp.zeros((256, h_pad), dtype).at[:, :hidden_size].set(
        jax.random.normal(ks[2], (256, hidden_size), dtype) * std)
    w4 = jnp.zeros((h_pad, o_pad), dtype).at[:hidden_size, :output_size].set(
        jax.random.normal(ks[3], (hidden_size, output_size), dtype) * std)
    g3 = jnp.zeros((1, h_pad), dtype).at[:, :hidden_size].set(1.0)

    return {
        "w1": jax.random.normal(ks[0], (1, 128), dtype) * std,
        "b1": jnp.zeros((1, 128), dtype),
        "g1": jnp.ones((1, 128), dtype),
        "be1": jnp.zeros((1, 128), dtype),
        "w2": jax.random.normal(ks[1], (128, 256), dtype) * std,
        "b2": jnp.zeros((1, 256), dtype),
        "g2": jnp.ones((1, 256), dtype),
        "be2": jnp.zeros((1, 256), dtype),
        "w3": w3,
        "b3": jnp.zeros((1, h_pad), dtype),
        "g3": g3,
        "be3": jnp.zeros((1, h_pad), dtype),
        "w4": w4,
        "b4": jnp.zeros((1, o_pad), dtype),
    }


@functools.partial(jax.jit, static_argnames=("hidden_size", "output_size"))
def fidelity_mlp_forward(x, params, hidden_size, output_size):
    """x: [batch, 1] -> [batch, output_size]"""
    batch = x.shape[0]
    h_pad = params["w3"].shape[1]
    o_pad = params["w4"].shape[1]

    # Batch tiling: largest tile up to MAX_TILE_B, multiple of 8 sublanes.
    tile_b = min(MAX_TILE_B, _round_up(batch, 8))
    padded_batch = _round_up(batch, tile_b)
    if padded_batch != batch:
        x = jnp.pad(x, ((0, padded_batch - batch), (0, 0)))
    grid = (padded_batch // tile_b,)

    param_args = (
        params["w1"], params["b1"], params["g1"], params["be1"],
        params["w2"], params["b2"], params["g2"], params["be2"],
        params["w3"], params["b3"], params["g3"], params["be3"],
        params["w4"], params["b4"],
    )

    def _resident_spec(arr):
        # Full-shape block, same block every grid step -> stays in VMEM.
        return pl.BlockSpec(arr.shape, lambda i: (0, 0))

    in_specs = (
        [pl.BlockSpec((tile_b, 1), lambda i: (i, 0))]
        + [_resident_spec(a) for a in param_args]
    )
    out_specs = pl.BlockSpec((tile_b, o_pad), lambda i: (i, 0))

    param_bytes = sum(int(a.size) * a.dtype.itemsize for a in param_args)
    flops = 2 * padded_batch * (1 * 128 + 128 * 256 + 256 * h_pad + h_pad * o_pad)
    transcendentals = padded_batch * (128 + 256 + h_pad)  # sigmoid/tanh (+rsqrt)
    bytes_accessed = (int(x.size) * x.dtype.itemsize
                      + padded_batch * o_pad * 4
                      + param_bytes)

    out = pl.pallas_call(
        functools.partial(fidelity_mlp_kernel, hidden_logical=hidden_size),
        out_shape=jax.ShapeDtypeStruct((padded_batch, o_pad), x.dtype),
        grid=grid,
        in_specs=in_specs,
        out_specs=out_specs,
        compiler_params=pltpu.CompilerParams(
            dimension_semantics=("parallel",)),
        cost_estimate=pl.CostEstimate(
            flops=flops,
            transcendentals=transcendentals,
            bytes_accessed=bytes_accessed),
    )(x, *param_args)

    return out[:batch, :output_size]


def adjust_dimension(embeddings, target_dim):
    """Plain-JAX glue matching FidelityMLP._adjust_dimension (pad/truncate)."""
    current_dim = embeddings.shape[-1]
    if target_dim > current_dim:
        pad = jnp.zeros((*embeddings.shape[:-1], target_dim - current_dim),
                        dtype=embeddings.dtype)
        return jnp.concatenate([embeddings, pad], axis=-1)
    elif target_dim < current_dim:
        return embeddings[..., :target_dim]
    return embeddings


def reference_forward(x, params, hidden_size, output_size):
    """Pure-JAX reference on the logical (un-padded) slices of the params,
    mirroring the kernel's bf16-operand / f32-accumulate dots."""
    h = x.astype(jnp.float32) * params["w1"] + params["b1"]
    h = _silu(_layernorm(h, params["g1"], params["be1"]))
    h = jnp.dot(h.astype(jnp.bfloat16), params["w2"].astype(jnp.bfloat16),
                preferred_element_type=jnp.float32) + params["b2"]
    h = _silu(_layernorm(h, params["g2"], params["be2"]))
    w3 = params["w3"][:, :hidden_size]
    h = jnp.dot(h.astype(jnp.bfloat16), w3.astype(jnp.bfloat16),
                preferred_element_type=jnp.float32) + params["b3"][:, :hidden_size]
    h = jnp.tanh(_layernorm(h, params["g3"][:, :hidden_size],
                            params["be3"][:, :hidden_size]))
    w4 = params["w4"][:hidden_size, :output_size]
    return (jnp.dot(h.astype(jnp.bfloat16), w4.astype(jnp.bfloat16),
                    preferred_element_type=jnp.float32)
            + params["b4"][:, :output_size])


if __name__ == "__main__":
    hidden_size = 32
    output_size = 32

    key = jax.random.PRNGKey(0)
    pkey, xkey, xkey2 = jax.random.split(key, 3)
    params = init_params(pkey, hidden_size, output_size)

    # Small demo batch (torch forward contract: [batch_size, 1]).
    batch = 8
    x = jax.random.uniform(xkey, (batch, 1), jnp.float32)
    out = jax.block_until_ready(fidelity_mlp_forward(x, params, hidden_size, output_size))
    ref = reference_forward(x, params, hidden_size, output_size)
    assert out.shape == (batch, output_size)
    assert jnp.allclose(out, ref, atol=5e-4, rtol=1e-3), "mismatch vs reference (small batch)"

    # Larger, non-multiple batch: exercises multi-step batch grid + padding.
    batch2 = 2000
    x2 = jax.random.uniform(xkey2, (batch2, 1), jnp.float32)
    out2 = jax.block_until_ready(fidelity_mlp_forward(x2, params, hidden_size, output_size))
    ref2 = reference_forward(x2, params, hidden_size, output_size)
    assert out2.shape == (batch2, output_size)
    assert jnp.allclose(out2, ref2, atol=5e-4, rtol=1e-3), "mismatch vs reference (large batch)"

    # Optional target_dim adjustment (plain-JAX glue, like torch cat/slice).
    padded = adjust_dimension(out, 48)
    truncated = adjust_dimension(out, 16)
    assert padded.shape == (batch, 48) and truncated.shape == (batch, 16)

    print("KERNEL_OK")
</pallas_src>

<mosaic_0001>
module attributes {stable_mosaic.version = 11 : i64} {
  func.func @fidelity_mlp_kernel(%arg0: i32, %arg1: memref<8x1xf32, #tpu.memory_space<vmem>>, %arg2: memref<1x128xf32, #tpu.memory_space<vmem>>, %arg3: memref<1x128xf32, #tpu.memory_space<vmem>>, %arg4: memref<1x128xf32, #tpu.memory_space<vmem>>, %arg5: memref<1x128xf32, #tpu.memory_space<vmem>>, %arg6: memref<128x256xf32, #tpu.memory_space<vmem>>, %arg7: memref<1x256xf32, #tpu.memory_space<vmem>>, %arg8: memref<1x256xf32, #tpu.memory_space<vmem>>, %arg9: memref<1x256xf32, #tpu.memory_space<vmem>>, %arg10: memref<256x128xf32, #tpu.memory_space<vmem>>, %arg11: memref<1x128xf32, #tpu.memory_space<vmem>>, %arg12: memref<1x128xf32, #tpu.memory_space<vmem>>, %arg13: memref<1x128xf32, #tpu.memory_space<vmem>>, %arg14: memref<128x128xf32, #tpu.memory_space<vmem>>, %arg15: memref<1x128xf32, #tpu.memory_space<vmem>>, %arg16: memref<8x128xf32, #tpu.memory_space<vmem>>) attributes {dimension_semantics = [#tpu.dimension_semantics<parallel>], iteration_bounds = array<i64: 1>, scalar_prefetch = 0 : i64, scratch_operands = 0 : i64, tpu.core_type = #tpu.core_type<tc>, window_params = [{transform_indices = @transform_0, window_bounds = array<i64: 8, 1>}, {pipeline_mode = #tpu.pipeline_mode<synchronous>, transform_indices = @transform_1, window_bounds = array<i64: 1, 128>}, {pipeline_mode = #tpu.pipeline_mode<synchronous>, transform_indices = @transform_2, window_bounds = array<i64: 1, 128>}, {pipeline_mode = #tpu.pipeline_mode<synchronous>, transform_indices = @transform_3, window_bounds = array<i64: 1, 128>}, {pipeline_mode = #tpu.pipeline_mode<synchronous>, transform_indices = @transform_4, window_bounds = array<i64: 1, 128>}, {pipeline_mode = #tpu.pipeline_mode<synchronous>, transform_indices = @transform_5, window_bounds = array<i64: 128, 256>}, {pipeline_mode = #tpu.pipeline_mode<synchronous>, transform_indices = @transform_6, window_bounds = array<i64: 1, 256>}, {pipeline_mode = #tpu.pipeline_mode<synchronous>, transform_indices = @transform_7, window_bounds = array<i64: 1, 256>}, {pipeline_mode = #tpu.pipeline_mode<synchronous>, transform_indices = @transform_8, window_bounds = array<i64: 1, 256>}, {pipeline_mode = #tpu.pipeline_mode<synchronous>, transform_indices = @transform_9, window_bounds = array<i64: 256, 128>}, {pipeline_mode = #tpu.pipeline_mode<synchronous>, transform_indices = @transform_10, window_bounds = array<i64: 1, 128>}, {pipeline_mode = #tpu.pipeline_mode<synchronous>, transform_indices = @transform_11, window_bounds = array<i64: 1, 128>}, {pipeline_mode = #tpu.pipeline_mode<synchronous>, transform_indices = @transform_12, window_bounds = array<i64: 1, 128>}, {pipeline_mode = #tpu.pipeline_mode<synchronous>, transform_indices = @transform_13, window_bounds = array<i64: 128, 128>}, {pipeline_mode = #tpu.pipeline_mode<synchronous>, transform_indices = @transform_14, window_bounds = array<i64: 1, 128>}, {transform_indices = @transform_15, window_bounds = array<i64: 8, 128>}]} {
    %c0 = arith.constant 0 : index
    %c0_0 = arith.constant 0 : index
    %0 = vector.load %arg1[%c0, %c0_0] : memref<8x1xf32, #tpu.memory_space<vmem>>, vector<8x1xf32>
    %c0_1 = arith.constant 0 : index
    %c0_2 = arith.constant 0 : index
    %1 = vector.load %arg2[%c0_1, %c0_2] : memref<1x128xf32, #tpu.memory_space<vmem>>, vector<1x128xf32>
    %2 = vector.broadcast %0 : vector<8x1xf32> to vector<8x128xf32>
    %3 = vector.broadcast %1 : vector<1x128xf32> to vector<8x128xf32>
    %4 = arith.mulf %2, %3 : vector<8x128xf32>
    %c0_3 = arith.constant 0 : index
    %c0_4 = arith.constant 0 : index
    %5 = vector.load %arg3[%c0_3, %c0_4] : memref<1x128xf32, #tpu.memory_space<vmem>>, vector<1x128xf32>
    %6 = vector.broadcast %5 : vector<1x128xf32> to vector<8x128xf32>
    %7 = arith.addf %4, %6 : vector<8x128xf32>
    %c0_5 = arith.constant 0 : index
    %c0_6 = arith.constant 0 : index
    %8 = vector.load %arg4[%c0_5, %c0_6] : memref<1x128xf32, #tpu.memory_space<vmem>>, vector<1x128xf32>
    %c0_7 = arith.constant 0 : index
    %c0_8 = arith.constant 0 : index
    %9 = vector.load %arg5[%c0_7, %c0_8] : memref<1x128xf32, #tpu.memory_space<vmem>>, vector<1x128xf32>
    %cst = arith.constant dense<0.000000e+00> : vector<8xf32>
    %10 = vector.multi_reduction <add>, %7, %cst [1] : vector<8x128xf32> to vector<8xf32>
    %11 = vector.shape_cast %10 : vector<8xf32> to vector<8x1xf32>
    %cst_9 = arith.constant 1.280000e+02 : f32
    %12 = vector.broadcast %cst_9 : f32 to vector<8x1xf32>
    %13 = arith.divf %11, %12 : vector<8x1xf32>
    %14 = vector.broadcast %13 : vector<8x1xf32> to vector<8x128xf32>
    %15 = arith.subf %7, %14 : vector<8x128xf32>
    %16 = arith.mulf %15, %15 : vector<8x128xf32>
    %cst_10 = arith.constant dense<0.000000e+00> : vector<8xf32>
    %17 = vector.multi_reduction <add>, %16, %cst_10 [1] : vector<8x128xf32> to vector<8xf32>
    %18 = vector.shape_cast %17 : vector<8xf32> to vector<8x1xf32>
    %cst_11 = arith.constant 1.280000e+02 : f32
    %19 = vector.broadcast %cst_11 : f32 to vector<8x1xf32>
    %20 = arith.divf %18, %19 : vector<8x1xf32>
    %cst_12 = arith.constant 9.99999974E-6 : f32
    %21 = vector.broadcast %cst_12 : f32 to vector<8x1xf32>
    %22 = arith.addf %20, %21 : vector<8x1xf32>
    %23 = math.rsqrt %22 : vector<8x1xf32>
    %24 = vector.broadcast %23 : vector<8x1xf32> to vector<8x128xf32>
    %25 = arith.mulf %15, %24 : vector<8x128xf32>
    %26 = vector.broadcast %8 : vector<1x128xf32> to vector<8x128xf32>
    %27 = arith.mulf %25, %26 : vector<8x128xf32>
    %28 = vector.broadcast %9 : vector<1x128xf32> to vector<8x128xf32>
    %29 = arith.addf %27, %28 : vector<8x128xf32>
    %30 = arith.negf %29 : vector<8x128xf32>
    %31 = math.exp %30 : vector<8x128xf32>
    %cst_13 = arith.constant 1.000000e+00 : f32
    %32 = vector.broadcast %cst_13 : f32 to vector<8x128xf32>
    %33 = arith.addf %32, %31 : vector<8x128xf32>
    %34 = arith.divf %32, %33 : vector<8x128xf32>
    %35 = arith.mulf %29, %34 : vector<8x128xf32>
    %36 = arith.truncf %35 : vector<8x128xf32> to vector<8x128xbf16>
    %c0_14 = arith.constant 0 : index
    %c0_15 = arith.constant 0 : index
    %37 = vector.load %arg6[%c0_14, %c0_15] : memref<128x256xf32, #tpu.memory_space<vmem>>, vector<128x256xf32>
    %38 = arith.truncf %37 : vector<128x256xf32> to vector<128x256xbf16>
    %cst_16 = arith.constant dense<0.000000e+00> : vector<8x256xf32>
    %39 = tpu.matmul %36, %38, %cst_16 {dimension_numbers = #tpu.dot_dimension_numbers<[1], [0], [0], [1], [0, 0, 1, 1], [], []>} : vector<8x128xbf16>, vector<128x256xbf16>, vector<8x256xf32> -> vector<8x256xf32>
    %c0_17 = arith.constant 0 : index
    %c0_18 = arith.constant 0 : index
    %40 = vector.load %arg7[%c0_17, %c0_18] : memref<1x256xf32, #tpu.memory_space<vmem>>, vector<1x256xf32>
    %41 = vector.broadcast %40 : vector<1x256xf32> to vector<8x256xf32>
    %42 = arith.addf %39, %41 : vector<8x256xf32>
    %c0_19 = arith.constant 0 : index
    %c0_20 = arith.constant 0 : index
    %43 = vector.load %arg8[%c0_19, %c0_20] : memref<1x256xf32, #tpu.memory_space<vmem>>, vector<1x256xf32>
    %c0_21 = arith.constant 0 : index
    %c0_22 = arith.constant 0 : index
    %44 = vector.load %arg9[%c0_21, %c0_22] : memref<1x256xf32, #tpu.memory_space<vmem>>, vector<1x256xf32>
    %cst_23 = arith.constant dense<0.000000e+00> : vector<8xf32>
    %45 = vector.multi_reduction <add>, %42, %cst_23 [1] : vector<8x256xf32> to vector<8xf32>
    %46 = vector.shape_cast %45 : vector<8xf32> to vector<8x1xf32>
    %cst_24 = arith.constant 2.560000e+02 : f32
    %47 = vector.broadcast %cst_24 : f32 to vector<8x1xf32>
    %48 = arith.divf %46, %47 : vector<8x1xf32>
    %49 = vector.broadcast %48 : vector<8x1xf32> to vector<8x256xf32>
    %50 = arith.subf %42, %49 : vector<8x256xf32>
    %51 = arith.mulf %50, %50 : vector<8x256xf32>
    %cst_25 = arith.constant dense<0.000000e+00> : vector<8xf32>
    %52 = vector.multi_reduction <add>, %51, %cst_25 [1] : vector<8x256xf32> to vector<8xf32>
    %53 = vector.shape_cast %52 : vector<8xf32> to vector<8x1xf32>
    %cst_26 = arith.constant 2.560000e+02 : f32
    %54 = vector.broadcast %cst_26 : f32 to vector<8x1xf32>
    %55 = arith.divf %53, %54 : vector<8x1xf32>
    %cst_27 = arith.constant 9.99999974E-6 : f32
    %56 = vector.broadcast %cst_27 : f32 to vector<8x1xf32>
    %57 = arith.addf %55, %56 : vector<8x1xf32>
    %58 = math.rsqrt %57 : vector<8x1xf32>
    %59 = vector.broadcast %58 : vector<8x1xf32> to vector<8x256xf32>
    %60 = arith.mulf %50, %59 : vector<8x256xf32>
    %61 = vector.broadcast %43 : vector<1x256xf32> to vector<8x256xf32>
    %62 = arith.mulf %60, %61 : vector<8x256xf32>
    %63 = vector.broadcast %44 : vector<1x256xf32> to vector<8x256xf32>
    %64 = arith.addf %62, %63 : vector<8x256xf32>
    %65 = arith.negf %64 : vector<8x256xf32>
    %66 = math.exp %65 : vector<8x256xf32>
    %cst_28 = arith.constant 1.000000e+00 : f32
    %67 = vector.broadcast %cst_28 : f32 to vector<8x256xf32>
    %68 = arith.addf %67, %66 : vector<8x256xf32>
    %69 = arith.divf %67, %68 : vector<8x256xf32>
    %70 = arith.mulf %64, %69 : vector<8x256xf32>
    %71 = arith.truncf %70 : vector<8x256xf32> to vector<8x256xbf16>
    %c0_29 = arith.constant 0 : index
    %c0_30 = arith.constant 0 : index
    %72 = vector.load %arg10[%c0_29, %c0_30] : memref<256x128xf32, #tpu.memory_space<vmem>>, vector<256x128xf32>
    %73 = arith.truncf %72 : vector<256x128xf32> to vector<256x128xbf16>
    %cst_31 = arith.constant dense<0.000000e+00> : vector<8x128xf32>
    %74 = tpu.matmul %71, %73, %cst_31 {dimension_numbers = #tpu.dot_dimension_numbers<[1], [0], [0], [1], [0, 0, 1, 1], [], []>} : vector<8x256xbf16>, vector<256x128xbf16>, vector<8x128xf32> -> vector<8x128xf32>
    %c0_32 = arith.constant 0 : index
    %c0_33 = arith.constant 0 : index
    %75 = vector.load %arg11[%c0_32, %c0_33] : memref<1x128xf32, #tpu.memory_space<vmem>>, vector<1x128xf32>
    %76 = vector.broadcast %75 : vector<1x128xf32> to vector<8x128xf32>
    %77 = arith.addf %74, %76 : vector<8x128xf32>
    %c0_34 = arith.constant 0 : index
    %c0_35 = arith.constant 0 : index
    %78 = vector.load %arg12[%c0_34, %c0_35] : memref<1x128xf32, #tpu.memory_space<vmem>>, vector<1x128xf32>
    %c0_36 = arith.constant 0 : index
    %c0_37 = arith.constant 0 : index
    %79 = vector.load %arg13[%c0_36, %c0_37] : memref<1x128xf32, #tpu.memory_space<vmem>>, vector<1x128xf32>
    %80 = tpu.iota {dimensions = array<i32: 1>} : vector<1x128xi32>
    %c32_i32 = arith.constant 32 : i32
    %81 = vector.broadcast %c32_i32 : i32 to vector<1x128xi32>
    %82 = arith.cmpi slt, %80, %81 : vector<1x128xi32>
    %83 = arith.extui %82 : vector<1x128xi1> to vector<1x128xi32>
    %84 = arith.sitofp %83 : vector<1x128xi32> to vector<1x128xf32>
    %85 = vector.broadcast %84 : vector<1x128xf32> to vector<8x128xf32>
    %86 = arith.mulf %77, %85 : vector<8x128xf32>
    %cst_38 = arith.constant dense<0.000000e+00> : vector<8xf32>
    %87 = vector.multi_reduction <add>, %86, %cst_38 [1] : vector<8x128xf32> to vector<8xf32>
    %88 = vector.shape_cast %87 : vector<8xf32> to vector<8x1xf32>
    %cst_39 = arith.constant 3.200000e+01 : f32
    %89 = vector.broadcast %cst_39 : f32 to vector<8x1xf32>
    %90 = arith.divf %88, %89 : vector<8x1xf32>
    %91 = vector.broadcast %90 : vector<8x1xf32> to vector<8x128xf32>
    %92 = arith.subf %77, %91 : vector<8x128xf32>
    %93 = vector.broadcast %84 : vector<1x128xf32> to vector<8x128xf32>
    %94 = arith.mulf %92, %93 : vector<8x128xf32>
    %95 = arith.mulf %94, %94 : vector<8x128xf32>
    %cst_40 = arith.constant dense<0.000000e+00> : vector<8xf32>
    %96 = vector.multi_reduction <add>, %95, %cst_40 [1] : vector<8x128xf32> to vector<8xf32>
    %97 = vector.shape_cast %96 : vector<8xf32> to vector<8x1xf32>
    %cst_41 = arith.constant 3.200000e+01 : f32
    %98 = vector.broadcast %cst_41 : f32 to vector<8x1xf32>
    %99 = arith.divf %97, %98 : vector<8x1xf32>
    %cst_42 = arith.constant 9.99999974E-6 : f32
    %100 = vector.broadcast %cst_42 : f32 to vector<8x1xf32>
    %101 = arith.addf %99, %100 : vector<8x1xf32>
    %102 = math.rsqrt %101 : vector<8x1xf32>
    %103 = vector.broadcast %102 : vector<8x1xf32> to vector<8x128xf32>
    %104 = arith.mulf %94, %103 : vector<8x128xf32>
    %105 = vector.broadcast %78 : vector<1x128xf32> to vector<8x128xf32>
    %106 = arith.mulf %104, %105 : vector<8x128xf32>
    %107 = vector.broadcast %79 : vector<1x128xf32> to vector<8x128xf32>
    %108 = arith.addf %106, %107 : vector<8x128xf32>
    %109 = math.tanh %108 : vector<8x128xf32>
    %110 = arith.truncf %109 : vector<8x128xf32> to vector<8x128xbf16>
    %c0_43 = arith.constant 0 : index
    %c0_44 = arith.constant 0 : index
    %111 = vector.load %arg14[%c0_43, %c0_44] : memref<128x128xf32, #tpu.memory_space<vmem>>, vector<128x128xf32>
    %112 = arith.truncf %111 : vector<128x128xf32> to vector<128x128xbf16>
    %cst_45 = arith.constant dense<0.000000e+00> : vector<8x128xf32>
    %113 = tpu.matmul %110, %112, %cst_45 {dimension_numbers = #tpu.dot_dimension_numbers<[1], [0], [0], [1], [0, 0, 1, 1], [], []>} : vector<8x128xbf16>, vector<128x128xbf16>, vector<8x128xf32> -> vector<8x128xf32>
    %c0_46 = arith.constant 0 : index
    %c0_47 = arith.constant 0 : index
    %114 = vector.load %arg15[%c0_46, %c0_47] : memref<1x128xf32, #tpu.memory_space<vmem>>, vector<1x128xf32>
    %115 = vector.broadcast %114 : vector<1x128xf32> to vector<8x128xf32>
    %116 = arith.addf %113, %115 : vector<8x128xf32>
    %c0_48 = arith.constant 0 : index
    %c0_49 = arith.constant 0 : index
    %117 = vector.load %arg16[%c0_48, %c0_49] : memref<8x128xf32, #tpu.memory_space<vmem>>, vector<8x128xf32>
    tpu.vector_store %arg16[%c0_48, %c0_49], %116 {strides = array<i32>} : memref<8x128xf32, #tpu.memory_space<vmem>>, vector<8x128xf32>,
    return
  }
  func.func @transform_0(%arg0: i32) -> (i32, i32) {
    %c0_i32 = arith.constant 0 : i32
    %c0_i32_0 = arith.constant 0 : i32
    return %arg0, %c0_i32 : i32, i32
  }
  func.func @transform_1(%arg0: i32) -> (i32, i32) {
    %c0_i32 = arith.constant 0 : i32
    %c0_i32_0 = arith.constant 0 : i32
    %c0_i32_1 = arith.constant 0 : i32
    return %c0_i32, %c0_i32_0 : i32, i32
  }
  func.func @transform_2(%arg0: i32) -> (i32, i32) {
    %c0_i32 = arith.constant 0 : i32
    %c0_i32_0 = arith.constant 0 : i32
    %c0_i32_1 = arith.constant 0 : i32
    return %c0_i32, %c0_i32_0 : i32, i32
  }
  func.func @transform_3(%arg0: i32) -> (i32, i32) {
    %c0_i32 = arith.constant 0 : i32
    %c0_i32_0 = arith.constant 0 : i32
    %c0_i32_1 = arith.constant 0 : i32
    return %c0_i32, %c0_i32_0 : i32, i32
  }
  func.func @transform_4(%arg0: i32) -> (i32, i32) {
    %c0_i32 = arith.constant 0 : i32
    %c0_i32_0 = arith.constant 0 : i32
    %c0_i32_1 = arith.constant 0 : i32
    return %c0_i32, %c0_i32_0 : i32, i32
  }
  func.func @transform_5(%arg0: i32) -> (i32, i32) {
    %c0_i32 = arith.constant 0 : i32
    %c0_i32_0 = arith.constant 0 : i32
    %c0_i32_1 = arith.constant 0 : i32
    return %c0_i32, %c0_i32_0 : i32, i32
  }
  func.func @transform_6(%arg0: i32) -> (i32, i32) {
    %c0_i32 = arith.constant 0 : i32
    %c0_i32_0 = arith.constant 0 : i32
    %c0_i32_1 = arith.constant 0 : i32
    return %c0_i32, %c0_i32_0 : i32, i32
  }
  func.func @transform_7(%arg0: i32) -> (i32, i32) {
    %c0_i32 = arith.constant 0 : i32
    %c0_i32_0 = arith.constant 0 : i32
    %c0_i32_1 = arith.constant 0 : i32
    return %c0_i32, %c0_i32_0 : i32, i32
  }
  func.func @transform_8(%arg0: i32) -> (i32, i32) {
    %c0_i32 = arith.constant 0 : i32
    %c0_i32_0 = arith.constant 0 : i32
    %c0_i32_1 = arith.constant 0 : i32
    return %c0_i32, %c0_i32_0 : i32, i32
  }
  func.func @transform_9(%arg0: i32) -> (i32, i32) {
    %c0_i32 = arith.constant 0 : i32
    %c0_i32_0 = arith.constant 0 : i32
    %c0_i32_1 = arith.constant 0 : i32
    return %c0_i32, %c0_i32_0 : i32, i32
  }
  func.func @transform_10(%arg0: i32) -> (i32, i32) {
    %c0_i32 = arith.constant 0 : i32
    %c0_i32_0 = arith.constant 0 : i32
    %c0_i32_1 = arith.constant 0 : i32
    return %c0_i32, %c0_i32_0 : i32, i32
  }
  func.func @transform_11(%arg0: i32) -> (i32, i32) {
    %c0_i32 = arith.constant 0 : i32
    %c0_i32_0 = arith.constant 0 : i32
    %c0_i32_1 = arith.constant 0 : i32
    return %c0_i32, %c0_i32_0 : i32, i32
  }
  func.func @transform_12(%arg0: i32) -> (i32, i32) {
    %c0_i32 = arith.constant 0 : i32
    %c0_i32_0 = arith.constant 0 : i32
    %c0_i32_1 = arith.constant 0 : i32
    return %c0_i32, %c0_i32_0 : i32, i32
  }
  func.func @transform_13(%arg0: i32) -> (i32, i32) {
    %c0_i32 = arith.constant 0 : i32
    %c0_i32_0 = arith.constant 0 : i32
    %c0_i32_1 = arith.constant 0 : i32
    return %c0_i32, %c0_i32_0 : i32, i32
  }
  func.func @transform_14(%arg0: i32) -> (i32, i32) {
    %c0_i32 = arith.constant 0 : i32
    %c0_i32_0 = arith.constant 0 : i32
    %c0_i32_1 = arith.constant 0 : i32
    return %c0_i32, %c0_i32_0 : i32, i32
  }
  func.func @transform_15(%arg0: i32) -> (i32, i32) {
    %c0_i32 = arith.constant 0 : i32
    %c0_i32_0 = arith.constant 0 : i32
    return %arg0, %c0_i32 : i32, i32
  }
}

</mosaic_0001>

<bundles_post_ra>
// kernel: fidelity_mlp_forward.1
= control target key start
LH: loop header
LB: loop body
LE: loop exit
PB: predicated region body
PF: predicated region fallthrough
CT: control target
= control target key end

     0   :  { %20 = vsyncpa [#allocation3], 0  ;;  %s880_s0 = inlined_call_operand.vmem [shape: f32[8,1], index: 0, kind: input, shape index: {}]   ;;  %s881_s1 = inlined_call_operand.vmem [shape: f32[1,128], index: 1, kind: input, shape index: {}]   ;;  %s882_s2 = inlined_call_operand.vmem [shape: f32[1,128], index: 2, kind: input, shape index: {}]   ;;  %s883_s3 = inlined_call_operand.vmem [shape: f32[1,128], index: 3, kind: input, shape index: {}]   ;;  %s884_s4 = inlined_call_operand.vmem [shape: f32[1,128], index: 4, kind: input, shape index: {}]   ;;  %s885_s5 = inlined_call_operand.hbm [shape: f32[128,256], index: 5, kind: input, shape index: {}]   ;;  %s886_s6 = inlined_call_operand.vmem [shape: f32[1,256], index: 6, kind: input, shape index: {}]   ;;  %s887_s7 = inlined_call_operand.vmem [shape: f32[1,256], index: 7, kind: input, shape index: {}]   ;;  %s888_s8 = inlined_call_operand.vmem [shape: f32[1,256], index: 8, kind: input, shape index: {}]   ;;  %s889_s9 = inlined_call_operand.hbm [shape: f32[256,128], index: 9, kind: input, shape index: {}]   ;;  %s890_s10 = inlined_call_operand.vmem [shape: f32[1,128], index: 10, kind: input, shape index: {}]   ;;  %s891_s11 = inlined_call_operand.vmem [shape: f32[1,128], index: 11, kind: input, shape index: {}]   ;;  %s892_s12 = inlined_call_operand.vmem [shape: f32[1,128], index: 12, kind: input, shape index: {}]   ;;  %s893_s13 = inlined_call_operand.hbm [shape: f32[128,128], index: 13, kind: input, shape index: {}]   ;;  %s894_s14 = inlined_call_operand.vmem [shape: f32[1,128], index: 14, kind: input, shape index: {}]   ;;  %s895_s15 = inlined_call_operand.hbm [shape: f32[8,128], index: 15, kind: output, shape index: {}]  }
   0x1   :  { %21 = vsyncpa [#allocation6], 0 }
   0x2   :  { %22 = vsyncpa [#allocation4], 0  ;;  %s714_s18 = smov [#allocation5]  }
   0x3   :  { %s56_s19 = sshll.u32 %s714_s18, 4  ;;  %s57_s19 = int_to_ptr.vmem [resolvable:$true] %s56_s19 }
   0x4   :  { %s636_s20 = scalar_lea.vmem %s57_s19, 4096  ;;  %p641_p1 = scmp.lt.s32.totalorder %s57_s19, %s57_s19 }
   0x5   :  { %p637_p0 = scmp.ne.s32.totalorder %s57_s19, %s636_s20  ;;  %p642_p2 = scmp.lt.s32.totalorder %s636_s20, %s636_s20 }
   0x7   :  { %p643_p3 = por %p642_p2, %p641_p1 }
   0x9   :  { %p644_p4 = pnand %p643_p3, %p637_p0 }
   0xb   :  { %647 = shalt.err (!%p644_p4)
}
   0xc   :  { %s715_s21 = smov 128   ;;  %s716_s22 = smov 8  }
   0xd   :  { %62 = dma.hbm_to_vmem [thread:$0]  %s889_s9, 4096, %s57_s19, [#allocation6], %s715_s21, %s715_s21, %s716_s22  }
   0xe   :  { %s717_s25 = smov [#allocation2]  }
   0xf   :  { %s38_s26 = sshll.u32 %s717_s25, 4  ;;  %s39_s26 = int_to_ptr.vmem [resolvable:$true] %s38_s26 }
  0x10   :  { %s656_s27 = scalar_lea.vmem %s39_s26, 4096  ;;  %p661_p6 = scmp.lt.s32.totalorder %s39_s26, %s39_s26 }
  0x11   :  { %p657_p5 = scmp.ne.s32.totalorder %s39_s26, %s656_s27  ;;  %p662_p7 = scmp.lt.s32.totalorder %s656_s27, %s656_s27 }
  0x13   :  { %p663_p8 = por %p662_p7, %p661_p6 }
  0x15   :  { %p664_p9 = pnand %p663_p8, %p657_p5 }
  0x17   :  { %667 = shalt.err (!%p664_p9)
}
  0x18   :  { %s718_s28 = smov 256   ;;  %s719_s29 = smov 16  }
  0x19   :  { %44 = dma.hbm_to_vmem [thread:$0]  %s885_s5, 4096, %s39_s26, [#allocation3], %s718_s28, %s718_s28, %s719_s29  }
  0x1a   :  { %s720_s17 = smov [#allocation7]  }
  0x1b   :  { %s74_s18 = sshll.u32 %s720_s17, 4  ;;  %s75_s18 = int_to_ptr.vmem [resolvable:$true] %s74_s18 }
  0x1c   :  { %s676_s9 = scalar_lea.vmem %s75_s18, 2048  ;;  %p681_p11 = scmp.lt.s32.totalorder %s75_s18, %s75_s18 }
  0x1d   :  { %p677_p10 = scmp.ne.s32.totalorder %s75_s18, %s676_s9  ;;  %p682_p12 = scmp.lt.s32.totalorder %s676_s9, %s676_s9 }
  0x1f   :  { %p683_p13 = por %p682_p12, %p681_p11 }
  0x21   :  { %p684_p0 = pnand %p683_p13, %p677_p10 }
  0x23   :  { %687 = shalt.err (!%p684_p0)
}
  0x24   :  { %80 = dma.hbm_to_vmem [thread:$0]  %s893_s13, 2048, %s75_s18, [#allocation6], %s715_s21, %s715_s21, %s716_s22  }
  0x25   :  { %708 = dma.done.wait [#allocation3], 4096  }
  0x26   :  { %709 = vsyncadd [#allocation3], 4294963200 }
  0x27   :  { %710 = dma.done.wait [#allocation6], 6144  }
  0x28   :  { %711 = vsyncadd [#allocation6], 4294961152  ;;  %v721_v0 = vmov 0   ;;  %v93_v1 = vld [vmem:[%s880_s0] sm:$0xff]  ;;  %v180_v11 = vld [vmem:[#allocation2 + $0xe8] sm:$0xff]  ;;  %vm723_vm1 = vmmov 0  }
  0x29   :  { %607 = vset.pattern.permute.xlu0 %v721_v0  ;;  %243 = vmatprep.mubr.bf16.mxu0 %v721_v0  ;;  %v533_v2 = vld [vmem:[%s881_s1] ss:$0 sm:$0xff]  ;;  %v182_v12 = vld [vmem:[#allocation2 + $0xf8] sm:$0xff]  ;;  %v181_v15 = vld [vmem:[#allocation2 + $0xf0] sm:$0xff]  ;;  %s724_s9 = smov [#allocation8]  }
  0x2a   :  { %97 = vperm.xlu0 %607, %v93_v1   ;;  %v534_v4 = vld [vmem:[%s882_s2] ss:$0 sm:$0xff]  ;;  %v198_v14 = vpack.c.bf16 %v182_v12, %v180_v11  ;;  %v176_v16 = vld [vmem:[#allocation2 + $0xc8] sm:$0xff]  ;;  %v178_v17 = vld [vmem:[#allocation2 + $0xd8] sm:$0xff]  ;;  %v201_v11 = vlaneseq  ;;  %s523_s19 = sshll.u32 %s724_s9, 4  ;;  %s524_s19 = int_to_ptr.vmem [resolvable:$true] %s523_s19 }
  0x2b   :  { %v179_v13 = vld [vmem:[#allocation2 + $0xe0] sm:$0xff]  ;;  %v196_v19 = vpack.c.bf16 %v178_v17, %v176_v16  ;;  %v177_v21 = vld [vmem:[#allocation2 + $0xd0] sm:$0xff]  ;;  %v172_v22 = vld [vmem:[#allocation2 + $0xa8] sm:$0xff]  ;;  %p693_p2 = scmp.lt.s32.totalorder %s524_s19, %s524_s19 }
  0x2c   :  { %v197_v18 = vpack.c.bf16 %v181_v15, %v179_v13  ;;  %v175_v20 = vld [vmem:[#allocation2 + $0xc0] sm:$0xff]  ;;  %211 = vmatprep.subr.bf16.mxu0 %v198_v14  ;;  %v174_v23 = vld [vmem:[#allocation2 + $0xb8] sm:$0xff]  ;;  %v173_v27 = vld [vmem:[#allocation2 + $0xb0] sm:$0xff]  ;;  %v202_v12 = vshrl.u32 %v201_v11, 7 }
  0x2d   :  { %v195_v24 = vpack.c.bf16 %v177_v21, %v175_v20  ;;  %v194_v25 = vpack.c.bf16 %v174_v23, %v172_v22  ;;  %v171_v26 = vld [vmem:[#allocation2 + $0xa0] sm:$0xff]  ;;  %v168_v28 = vld [vmem:[#allocation2 + $0x88] sm:$0xff]  ;;  %v170_v29 = vld [vmem:[#allocation2 + $0x98] sm:$0xff] }
  0x2e   :  { %212 = vmatpush1.bf16.msra.mxu0 %v197_v18  ;;  %v193_v30 = vpack.c.bf16 %v173_v27, %v171_v26  ;;  %v192_v31 = vpack.c.bf16 %v170_v29, %v168_v28  ;;  %v167_v32 = vld [vmem:[#allocation2 + $0x80] sm:$0xff]  ;;  %v169_v33 = vld [vmem:[#allocation2 + $0x90] sm:$0xff]  ;;  %v164_v34 = vld [vmem:[#allocation2 + $0x68] sm:$0xff]  ;;  %v835_v13 = vsub.s32 0, %v202_v12 }
  0x2f   :  { %213 = vmatprep.subr.bf16.mxu0 %v196_v19  ;;  %v166_v35 = vld [vmem:[#allocation2 + $0x78] sm:$0xff]  ;;  %v191_v36 = vpack.c.bf16 %v169_v33, %v167_v32  ;;  %v163_v38 = vld [vmem:[#allocation2 + $0x60] sm:$0xff]  ;;  %v165_v39 = vld [vmem:[#allocation2 + $0x70] sm:$0xff] }
  0x30   :  { %v190_v37 = vpack.c.bf16 %v166_v35, %v164_v34  ;;  %v160_v40 = vld [vmem:[#allocation2 + $0x48] sm:$0xff]  ;;  %v162_v41 = vld [vmem:[#allocation2 + $0x58] sm:$0xff]  ;;  %v189_v42 = vpack.c.bf16 %v165_v39, %v163_v38  ;;  %v159_v44 = vld [vmem:[#allocation2 + $0x40] sm:$0xff] }
  0x31   :  { %v188_v43 = vpack.c.bf16 %v162_v41, %v160_v40  ;;  %v161_v45 = vld [vmem:[#allocation2 + $0x50] sm:$0xff]  ;;  %v156_v46 = vld [vmem:[#allocation2 + $0x28] sm:$0xff]  ;;  %v158_v47 = vld [vmem:[#allocation2 + $0x38] sm:$0xff] }
  0x32   :  { %214 = vmatpush1.bf16.msra.mxu0 %v195_v24  ;;  %v187_v48 = vpack.c.bf16 %v161_v45, %v159_v44  ;;  %v186_v49 = vpack.c.bf16 %v158_v47, %v156_v46  ;;  %v155_v50 = vld [vmem:[#allocation2 + $0x20] sm:$0xff]  ;;  %v157_v51 = vld [vmem:[#allocation2 + $0x30] sm:$0xff]  ;;  %v152_v52 = vld [vmem:[#allocation2 + $0x8] sm:$0xff] }
  0x33   :  { %215 = vmatprep.subr.bf16.mxu0 %v194_v25  ;;  %v154_v53 = vld [vmem:[#allocation2 + $0x18] sm:$0xff]  ;;  %v185_v54 = vpack.c.bf16 %v157_v51, %v155_v50  ;;  %v151_v56 = vld [vmem:[#allocation2] sm:$0xff]  ;;  %v153_v57 = vld [vmem:[#allocation2 + $0x10] sm:$0xff] }
  0x34   :  { %v184_v55 = vpack.c.bf16 %v154_v53, %v152_v52  ;;  %v183_v58 = vpack.c.bf16 %v153_v57, %v151_v56  ;;  %v535_v63 = vld [vmem:[%s883_s3] ss:$0 sm:$0xff]  ;;  %v344_v32 = vld [vmem:[#allocation5 + $0xf8] sm:$0xff]  ;;  %v327_v33 = vld [vmem:[#allocation5 + $0x70] sm:$0xff] }
  0x35   :  { %v536_v1 = vld [vmem:[%s884_s4] ss:$0 sm:$0xff]  ;;  %v328_v35 = vld [vmem:[#allocation5 + $0x78] sm:$0xff]  ;;  %v326_v41 = vld [vmem:[#allocation5 + $0x68] sm:$0xff] }
  0x36   :  { %216 = vmatpush1.bf16.msra.mxu0 %v193_v30  ;;  %v199_v14 = vld [vmem:[%s886_s6] sm:$0x3]  ;;  %v352_v38 = vpack.c.bf16 %v328_v35, %v327_v33  ;;  %v323_v46 = vld [vmem:[#allocation5 + $0x50] sm:$0xff]  ;;  %v324_v47 = vld [vmem:[#allocation5 + $0x58] sm:$0xff] }
  0x37   :  { %217 = vmatprep.subr.bf16.mxu0 %v192_v31  ;;  %v204_v15 = vrot.slane %v199_v14, %v835_v13  ;;  %v343_v31 = vld [vmem:[#allocation5 + $0xf0] sm:$0xff]  ;;  %v325_v40 = vld [vmem:[#allocation5 + $0x60] sm:$0xff]  ;;  %v350_v50 = vpack.c.bf16 %v324_v47, %v323_v46  ;;  %v322_v53 = vld [vmem:[#allocation5 + $0x48] sm:$0xff] }
  0x38   :  { %v360_v34 = vpack.c.bf16 %v344_v32, %v343_v31  ;;  %v351_v44 = vpack.c.bf16 %v326_v41, %v325_v40  ;;  %v321_v52 = vld [vmem:[#allocation5 + $0x40] sm:$0xff] }
  0x39   :  { %v349_v56 = vpack.c.bf16 %v322_v53, %v321_v52  ;;  %v540_v47 = vld [vmem:[%s890_s10] ss:$0 sm:$0xff] }
  0x3a   :  { %218 = vmatpush1.bf16.msra.mxu0 %v191_v36  ;;  %v341_v36 = vld [vmem:[#allocation5 + $0xe0] sm:$0xff]  ;;  %545 = vmatprep.subr.bf16.mxu1 %v360_v34 }
  0x3b   :  { %219 = vmatprep.subr.bf16.mxu0 %v190_v37  ;;  %v342_v37 = vld [vmem:[#allocation5 + $0xe8] sm:$0xff]  ;;  %546 = vmatpush3.bf16.msra.mxu1 %v352_v38 }
  0x3c   :  { %v359_v39 = vpack.c.bf16 %v342_v37, %v341_v36 }
  0x3e   :  { %220 = vmatpush1.bf16.msra.mxu0 %v189_v42  ;;  %v339_v42 = vld [vmem:[#allocation5 + $0xd0] sm:$0xff]  ;;  %547 = vmatprep.subr.bf16.mxu1 %v359_v39 }
  0x3f   :  { %221 = vmatprep.subr.bf16.mxu0 %v188_v43  ;;  %v340_v43 = vld [vmem:[#allocation5 + $0xd8] sm:$0xff]  ;;  %548 = vmatpush3.bf16.msra.mxu1 %v351_v44  ;;  %v722_v44 = vmov 0.0  }
  0x40   :  { %v358_v45 = vpack.c.bf16 %v340_v43, %v339_v42 }
  0x42   :  { %222 = vmatpush1.bf16.msra.mxu0 %v187_v48  ;;  %v337_v48 = vld [vmem:[#allocation5 + $0xc0] sm:$0xff]  ;;  %549 = vmatprep.subr.bf16.mxu1 %v358_v45  ;;  %v411_v45 = vand.u32 127, %v201_v11  ;;  %v459_v11 = vld [vmem:[#allocation7 + $0x70] sm:$0xff] }
  0x43   :  { %223 = vmatprep.subr.bf16.mxu0 %v186_v49  ;;  %v338_v49 = vld [vmem:[#allocation5 + $0xc8] sm:$0xff]  ;;  %550 = vmatpush3.bf16.msra.mxu1 %v350_v50 }
  0x44   :  { %v357_v51 = vpack.c.bf16 %v338_v49, %v337_v48  ;;  %vm412_vm0 = vcmp.lt.s32.totalorder %v411_v45, 32 }
  0x46   :  { %224 = vmatpush1.bf16.msra.mxu0 %v185_v54  ;;  %v335_v54 = vld [vmem:[#allocation5 + $0xb0] sm:$0xff]  ;;  %551 = vmatprep.subr.bf16.mxu1 %v357_v51  ;;  %v541_v51 = vsel %vm412_vm0, 1.0, %v722_v44 }
  0x47   :  { %225 = vmatprep.subr.bf16.mxu0 %v184_v55  ;;  %v336_v55 = vld [vmem:[#allocation5 + $0xb8] sm:$0xff]  ;;  %552 = vmatpush3.bf16.msra.mxu1 %v349_v56 }
  0x48   :  { %v356_v57 = vpack.c.bf16 %v336_v55, %v335_v54 }
  0x4a   :  { %226 = vmatpush1.bf16.msra.mxu0 %v183_v58  ;;  %v319_v58 = vld [vmem:[#allocation5 + $0x30] sm:$0xff]  ;;  %553 = vmatprep.subr.bf16.mxu1 %v356_v57 }
  0x4b   :  { %576 = vmatprep.subr.bf16.mxu0 %v722_v44 }
  0xa5   :  { %v98_v3 = vpop.permute.xlu0 %97 }
  0xa6   :  { %v106_v5 = vmul.f32 %v533_v2, %v98_v3 }
  0xa8   :  { %v114_v6 = vadd.f32 %v534_v4, %v106_v5 }
  0xaa   :  { %117 = vadd.xlane.f32.xlu0 %v114_v6 }
 0x133   :  { %v118_v7 = vpop.xlane.xlu0 %117 }
 0x134   :  { %v120_v8 = vmul.f32 0.0078125, %v118_v7 }
 0x136   :  { %v823_v9 = vsub.f32 %v114_v6, %v120_v8 }
 0x138   :  { %v122_v10 = vmul.f32 %v823_v9, %v823_v9 }
 0x13a   :  { %123 = vadd.xlane.f32.xlu1 %v122_v10 }
 0x1c3   :  { %v124_v59 = vpop.xlane.xlu1 %123 }
 0x1c4   :  { %v125_v60 = vmul.f32 0.0078125, %v124_v59  ;;  %v320_v59 = vld [vmem:[#allocation5 + $0x38] sm:$0xff] }
 0x1c6   :  { %v126_v61 = vadd.f32 1e-05, %v125_v60  ;;  %v333_v60 = vld [vmem:[#allocation5 + $0xa0] sm:$0xff] }
 0x1c8   :  { %608 = vrsqrt.f32 %v126_v61  ;;  %v334_v61 = vld [vmem:[#allocation5 + $0xa8] sm:$0xff] }
 0x1d5   :  { %v609_v62 = vpop.eup %608 }
 0x1d6   :  { %v128_v0 = vmul.f32 %v609_v62, %v823_v9  ;;  %v837_v9 = vsub.s32 1, %v202_v12  ;;  %v348_v62 = vpack.c.bf16 %v320_v59, %v319_v58 }
 0x1d8   :  { %v135_v2 = vmul.f32 %v535_v63, %v128_v0  ;;  %v208_v16 = vrot.slane %v199_v14, %v837_v9  ;;  %v355_v63 = vpack.c.bf16 %v334_v61, %v333_v60  ;;  %v317_v0 = vld [vmem:[#allocation5 + $0x20] sm:$0xff]  ;;  %554 = vmatpush3.bf16.msra.mxu1 %v348_v62  ;;  %v460_v60 = vld [vmem:[#allocation7 + $0x78] sm:$0xff] }
 0x1d9   :  { %v468_v61 = vpack.c.bf16 %v460_v60, %v459_v11  ;;  %v457_v62 = vld [vmem:[#allocation7 + $0x60] sm:$0xff] }
 0x1da   :  { %v142_v3 = vadd.f32 %v536_v1, %v135_v2  ;;  %v318_v1 = vld [vmem:[#allocation5 + $0x28] sm:$0xff]  ;;  %v331_v2 = vld [vmem:[#allocation5 + $0x90] sm:$0xff]  ;;  %555 = vmatprep.subr.bf16.mxu1 %v355_v63 }
 0x1db   :  { %v458_v63 = vld [vmem:[#allocation7 + $0x68] sm:$0xff] }
 0x1dc   :  { %v537_v4 = vmul.f32 -1.442695, %v142_v3 }
 0x1de   :  { %610 = vpow2.f32 %v537_v4  ;;  %v347_v4 = vpack.c.bf16 %v318_v1, %v317_v0  ;;  %v467_v0 = vpack.c.bf16 %v458_v63, %v457_v62  ;;  %v455_v1 = vld [vmem:[#allocation7 + $0x50] sm:$0xff] }
 0x1e0   :  { %556 = vmatpush3.bf16.msra.mxu1 %v347_v4  ;;  %v453_v4 = vld [vmem:[#allocation7 + $0x40] sm:$0xff] }
 0x1eb   :  { %v611_v5 = vpop.eup %610 }
 0x1ec   :  { %v146_v6 = vadd.f32 1.0, %v611_v5 }
 0x1ee   :  { %612 = vrcp.f32 %v146_v6  ;;  %v315_v6 = vld [vmem:[#allocation5 + $0x10] sm:$0xff] }
 0x1fb   :  { %v613_v7 = vpop.eup %612 }
 0x1fc   :  { %v149_v8 = vmul.f32 %v613_v7, %v142_v3  ;;  %v332_v3 = vld [vmem:[#allocation5 + $0x98] sm:$0xff] }
 0x1fd   :  { %v354_v5 = vpack.c.bf16 %v332_v3, %v331_v2  ;;  %v316_v7 = vld [vmem:[#allocation5 + $0x18] sm:$0xff] }
 0x1fe   :  { %v150_v10 = vpack.c.bf16 %v149_v8, %v149_v8  ;;  %v329_v8 = vld [vmem:[#allocation5 + $0x80] sm:$0xff]  ;;  %v346_v12 = vpack.c.bf16 %v316_v7, %v315_v6  ;;  %v456_v2 = vld [vmem:[#allocation7 + $0x58] sm:$0xff]  ;;  %v451_v7 = vld [vmem:[#allocation7 + $0x30] sm:$0xff] }
 0x1ff   :  { %557 = vmatprep.subr.bf16.mxu1 %v354_v5  ;;  %v466_v3 = vpack.c.bf16 %v456_v2, %v455_v1  ;;  %v454_v5 = vld [vmem:[#allocation7 + $0x48] sm:$0xff] }
 0x200   :  { %244 = vmatmul.mubr.bf16.vlgmr.msra.gmra.mxu0 %v150_v10  ;;  %v330_v10 = vld [vmem:[#allocation5 + $0x88] sm:$0xff]  ;;  %558 = vmatpush3.bf16.msra.mxu1 %v346_v12  ;;  %v465_v6 = vpack.c.bf16 %v454_v5, %v453_v4  ;;  %v449_v12 = vld [vmem:[#allocation7 + $0x20] sm:$0xff] }
 0x201   :  { %v353_v14 = vpack.c.bf16 %v330_v10, %v329_v8  ;;  %577 = vmatpush3.bf16.msra.mxu0 %v468_v61  ;;  %v452_v8 = vld [vmem:[#allocation7 + $0x38] sm:$0xff]  ;;  %592 = vmatprep.mubr.msk.bf16.mxu0 %vm723_vm1, %v722_v44 }
 0x202   :  { %578 = vmatprep.subr.bf16.mxu0 %v722_v44  ;;  %v464_v10 = vpack.c.bf16 %v452_v8, %v451_v7 }
 0x203   :  { %559 = vmatprep.subr.bf16.mxu1 %v353_v14  ;;  %v450_v14 = vld [vmem:[#allocation7 + $0x28] sm:$0xff] }
 0x205   :  { %579 = vmatpush3.bf16.msra.mxu0 %v467_v0 }
 0x206   :  { %580 = vmatprep.subr.bf16.mxu0 %v722_v44 }
 0x209   :  { %581 = vmatpush3.bf16.msra.mxu0 %v466_v3 }
 0x20a   :  { %582 = vmatprep.subr.bf16.mxu0 %v722_v44 }
 0x20d   :  { %583 = vmatpush3.bf16.msra.mxu0 %v465_v6 }
 0x20e   :  { %584 = vmatprep.subr.bf16.mxu0 %v722_v44 }
 0x211   :  { %585 = vmatpush3.bf16.msra.mxu0 %v464_v10 }
 0x212   :  { %586 = vmatprep.subr.bf16.mxu0 %v722_v44 }
 0x2c0   :  { %v245_v17 = vpop.f32.mrf.mxu0 }
 0x2c1   :  { %v246_v19 = vadd.f32 %v245_v17, %v204_v15  ;;  %v313_v15 = vld [vmem:[#allocation5] sm:$0xff] }
 0x2c2   :  { %v247_v18 = vpop.f32.mrf.mxu0 }
 0x2c3   :  { %v248_v20 = vadd.f32 %v247_v18, %v208_v16  ;;  %v314_v16 = vld [vmem:[#allocation5 + $0x8] sm:$0xff] }
 0x2c4   :  { %v249_v21 = vpop.f32.mrf.mxu0  ;;  %v345_v17 = vpack.c.bf16 %v314_v16, %v313_v15  ;;  %v463_v15 = vpack.c.bf16 %v450_v14, %v449_v12  ;;  %v447_v16 = vld [vmem:[#allocation7 + $0x10] sm:$0xff] }
 0x2c5   :  { %v254_v22 = vadd.f32 %v248_v20, %v246_v19  ;;  %v252_v21 = vld [vmem:[%s887_s7] sm:$0x3] }
 0x2c6   :  { %v250_v23 = vpop.f32.mrf.mxu0  ;;  %560 = vmatpush3.bf16.msra.mxu1 %v345_v17  ;;  %v448_v17 = vld [vmem:[#allocation7 + $0x18] sm:$0xff]  ;;  %587 = vmatpush3.bf16.msra.mxu0 %v463_v15 }
 0x2c7   :  { %255 = vadd.xlane.f32.xlu1 %v254_v22  ;;  %v253_v22 = vld [vmem:[%s888_s8] sm:$0x3]  ;;  %v275_v23 = vrot.slane %v252_v21, %v835_v13  ;;  %588 = vmatprep.subr.bf16.mxu0 %v722_v44 }
 0x350   :  { %v256_v24 = vpop.xlane.xlu1 %255 }
 0x351   :  { %v258_v25 = vmul.f32 0.00390625, %v256_v24  ;;  %v279_v24 = vrot.slane %v252_v21, %v837_v9 }
 0x353   :  { %v844_v26 = vsub.f32 %v246_v19, %v258_v25  ;;  %v846_v27 = vsub.f32 %v248_v20, %v258_v25 }
 0x355   :  { %v261_v28 = vmul.f32 %v844_v26, %v844_v26  ;;  %v262_v29 = vmul.f32 %v846_v27, %v846_v27 }
 0x357   :  { %v263_v30 = vadd.f32 %v262_v29, %v261_v28  ;;  %v288_v29 = vrot.slane %v253_v22, %v835_v13 }
 0x359   :  { %264 = vadd.xlane.f32.xlu1 %v263_v30  ;;  %v292_v30 = vrot.slane %v253_v22, %v837_v9 }
 0x3e2   :  { %v265_v18 = vpop.xlane.xlu1 %264 }
 0x3e3   :  { %v266_v19 = vmul.f32 0.00390625, %v265_v18  ;;  %v462_v18 = vpack.c.bf16 %v448_v17, %v447_v16 }
 0x3e5   :  { %v267_v20 = vadd.f32 1e-05, %v266_v19  ;;  %v445_v19 = vld [vmem:[#allocation7] sm:$0xff]  ;;  %589 = vmatpush3.bf16.msra.mxu0 %v462_v18 }
 0x3e6   :  { %590 = vmatprep.subr.bf16.mxu0 %v722_v44 }
 0x3e7   :  { %614 = vrsqrt.f32 %v267_v20  ;;  %v446_v20 = vld [vmem:[#allocation7 + $0x8] sm:$0xff] }
 0x3e8   :  { %v461_v21 = vpack.c.bf16 %v446_v20, %v445_v19 }
 0x3ea   :  { %591 = vmatpush3.bf16.msra.mxu0 %v461_v21 }
 0x3f4   :  { %v615_v25 = vpop.eup %614 }
 0x3f5   :  { %v270_v28 = vmul.f32 %v615_v25, %v846_v27  ;;  %v269_v31 = vmul.f32 %v615_v25, %v844_v26 }
 0x3f7   :  { %v283_v32 = vmul.f32 %v279_v24, %v270_v28  ;;  %v282_v33 = vmul.f32 %v275_v23, %v269_v31  ;;  %v542_v28 = vld [vmem:[%s891_s11] ss:$0 sm:$0xff]  ;;  %s688_s11 = scalar_lea.vmem %s524_s19, 128 }
 0x3f8   :  { %p689_p1 = scmp.ne.s32.totalorder %s524_s19, %s688_s11  ;;  %p694_p3 = scmp.lt.s32.totalorder %s688_s11, %s688_s11 }
 0x3f9   :  { %v296_v34 = vadd.f32 %v292_v30, %v283_v32  ;;  %v295_v35 = vadd.f32 %v288_v29, %v282_v33  ;;  %v543_v30 = vld [vmem:[%s892_s12] ss:$0 sm:$0xff] }
 0x3fa   :  { %p695_p4 = por %p694_p3, %p693_p2 }
 0x3fb   :  { %v539_v36 = vmul.f32 -1.442695, %v296_v34  ;;  %v538_v37 = vmul.f32 -1.442695, %v295_v35 }
 0x3fc   :  { %p696_p5 = pnand %p695_p4, %p689_p1 }
 0x3fd   :  { %616 = vpow2.f32 %v539_v36 }
 0x3fe   :  { %618 = vpow2.f32 %v538_v37 }
 0x40a   :  { %v617_v38 = vpop.eup %616 }
 0x40b   :  { %v619_v39 = vpop.eup %618  ;;  %v304_v40 = vadd.f32 1.0, %v617_v38 }
 0x40c   :  { %v303_v41 = vadd.f32 1.0, %v619_v39 }
 0x40d   :  { %620 = vrcp.f32 %v304_v40 }
 0x40e   :  { %622 = vrcp.f32 %v303_v41 }
 0x41a   :  { %v621_v27 = vpop.eup %620 }
 0x41b   :  { %v623_v13 = vpop.eup %622  ;;  %v310_v42 = vmul.f32 %v621_v27, %v296_v34 }
 0x41c   :  { %v309_v9 = vmul.f32 %v623_v13, %v295_v35  ;;  %v544_v35 = vld [vmem:[%s894_s14] ss:$0 sm:$0xff] }
 0x41d   :  { %v312_v43 = vpack.c.bf16 %v310_v42, %v310_v42 }
 0x41e   :  { %v311_v26 = vpack.c.bf16 %v309_v9, %v309_v9 }
 0x41f   :  { %400 = vmatprep.mubr.bf16.mxu1 %v312_v43 }
 0x420   :  { %401 = vmatmul.mubr.bf16.vlgmr.msra.gmra.mxu1 %v311_v26 }
 0x4e0   :  { %v561_v46 = vpop.f32.mrf.mxu1 }
 0x4e2   :  { %v562_v48 = vpop.f32.mrf.mxu1 }
 0x4e3   :  { %v563_v49 = vadd.f32 %v562_v48, %v561_v46 }
 0x4e4   :  { %v564_v50 = vpop.f32.mrf.mxu1 }
 0x4e5   :  { %v403_v52 = vadd.f32 %v563_v49, %v540_v47 }
 0x4e6   :  { %v565_v53 = vpop.f32.mrf.mxu1 }
 0x4e7   :  { %v415_v54 = vmul.f32 %v541_v51, %v403_v52 }
 0x4e9   :  { %416 = vadd.xlane.f32.xlu1 %v415_v54 }
 0x572   :  { %v417_v55 = vpop.xlane.xlu1 %416 }
 0x573   :  { %v419_v56 = vmul.f32 0.03125, %v417_v55 }
 0x575   :  { %v420_v57 = vsub.f32 %v403_v52, %v419_v56 }
 0x577   :  { %v421_v58 = vmul.f32 %v541_v51, %v420_v57 }
 0x579   :  { %v422_v59 = vmul.f32 %v421_v58, %v421_v58 }
 0x57b   :  { %423 = vadd.xlane.f32.xlu1 %v422_v59 }
 0x604   :  { %v424_v22 = vpop.xlane.xlu1 %423 }
 0x605   :  { %v425_v23 = vmul.f32 0.03125, %v424_v22 }
 0x607   :  { %v426_v24 = vadd.f32 1e-05, %v425_v23 }
 0x609   :  { %624 = vrsqrt.f32 %v426_v24 }
 0x616   :  { %v625_v25 = vpop.eup %624 }
 0x617   :  { %v428_v29 = vmul.f32 %v625_v25, %v421_v58 }
 0x619   :  { %v435_v31 = vmul.f32 %v542_v28, %v428_v29 }
 0x61b   :  { %v442_v32 = vadd.f32 %v543_v30, %v435_v31 }
 0x61d   :  { %626 = vtanh.f32 %v442_v32 }
 0x62a   :  { %v627_v33 = vpop.eup %626 }
 0x62b   :  { %v444_v34 = vpack.c.bf16 %v627_v33, %v627_v33 }
 0x62d   :  { %593 = vmatmul.mubr.bf16.vlgmr.msra.gmra.mxu0 %v444_v34 }
 0x6ed   :  { %v510_v36 = vpop.f32.mrf.mxu0 }
 0x6ee   :  { %v511_v37 = vadd.f32 %v544_v35, %v510_v36 }
 0x6ef   :  { %v594_v38 = vpop.f32.mrf.mxu0 }
 0x6f0   :  { %516 = vst [vmem:[#allocation8] sm:$0xff] %v511_v37 }
 0x6f1   :  { %v513_v39 = vpop.f32.mrf.mxu0 }
 0x6f2   :  { %699 = shalt.err (!%p696_p5)
}
 0x6f3   :  { %526 = dma.vmem_to_hbm [thread:$0]  %s524_s19, 128, %s895_s15, [#allocation4]   ;;  %v595_v40 = vpop.f32.mrf.mxu0 }
 0x6f4   :  { %712 = dma.done.wait [#allocation4], 128  }
 0x6f5   :  { %713 = vsyncadd [#allocation4], 4294967168 }
 0x6f6   :  { %530 = vsyncpa [#allocation3], 1 }
 0x6f7   :  { %531 = vsyncpa [#allocation6], 1 }
 0x6f8   :  { %532 = vsyncpa [#allocation4], 1 }

</bundles_post_ra>
